<compile_context>
chip_gen: v7x
topology: tpu7x:2x2x1
jax: 0.10.0
libtpu: 0.0.40
codegen_flags: <defaults>
</compile_context>

<pallas_src>
import jax
import jax.numpy as jnp
from jax.experimental import pallas as pl
from jax.experimental.pallas import tpu as pltpu


_NEG_INF = -1e30        # bias value for padded label columns (finite: avoids 0*inf NaN)
_IGNORE_INDEX = -100    # torch.nn.CrossEntropyLoss default ignore_index


def _round_up(x, m):
    return (x + m - 1) // m * m


def ner_logits_kernel(h_ref, w_ref, b_ref, logits_ref):
    """Inference path: classifier matmul + bias only.

    h_ref      : [TM, H]  bf16   hidden-state tile
    w_ref      : [H, Lp]  bf16   classifier weight (VMEM-resident across tiles)
    b_ref      : [1, Lp]  f32    bias (padded columns hold -1e30; sliced off later)
    logits_ref : [TM, Lp] f32    lane-dense logits tile
    """
    logits_ref[...] = (
        jnp.dot(h_ref[...], w_ref[...], preferred_element_type=jnp.float32)
        + b_ref[...]
    )


def ner_loss_kernel(h_ref, w_ref, b_ref, y_ref, logits_ref, nll_ref, cnt_ref):
    """Training/eval path: classifier + per-tile cross-entropy partial sums.

    y_ref   : [TM, 1]  int32  labels (-100 = ignored, torch semantics)
    nll_ref : [8, Lp]  f32    partial NLL sums for this tile (sum-all = tile NLL)
    cnt_ref : [8, Lp]  f32    partial valid-token counts for this tile
    """
    logits = (
        jnp.dot(h_ref[...], w_ref[...], preferred_element_type=jnp.float32)
        + b_ref[...]
    )
    logits_ref[...] = logits

    # numerically stable log-softmax in f32 (padded columns are ~ -1e30 -> exp==0)
    m = jnp.max(logits, axis=-1, keepdims=True)
    z = logits - m
    lse = jnp.log(jnp.sum(jnp.exp(z), axis=-1, keepdims=True))
    log_probs = z - lse

    # one-hot gather of the label column; label==-100 never matches -> contributes 0
    cls_ids = jax.lax.broadcasted_iota(jnp.int32, logits.shape, 1)
    onehot = (cls_ids == y_ref[...]).astype(jnp.float32)       # [TM, Lp]
    nll = onehot * (-log_probs)                                 # [TM, Lp]

    # Reduce the tile to an (8, 128) lane-dense partial-sum block: row 0 holds
    # the per-lane column sums, rows 1..7 are zero.  Wrapper sums everything.
    sub = jax.lax.broadcasted_iota(jnp.int32, nll_ref.shape, 0)
    nll_ref[...] = jnp.where(sub == 0, jnp.sum(nll, axis=0, keepdims=True), 0.0)
    cnt_ref[...] = jnp.where(sub == 0, jnp.sum(onehot, axis=0, keepdims=True), 0.0)


def medical_ner_forward(hidden_states, classifier_w, classifier_b, labels=None,
                        attention_mask=None, tile_m=None):
    """Pallas-backed MedicalNER forward (classifier head + optional CE loss).

    hidden_states : [B, S, H]  backbone output ("sequence_output")
    classifier_w  : [L, H]     torch nn.Linear weight layout
    classifier_b  : [L]
    labels        : [B, S] int or None; entries == -100 are ignored (torch default)
    Returns dict {'logits': [B,S,L], 'loss': scalar or None, 'hidden_states': None}.
    """
    del attention_mask  # only affects the (un-modeled) backbone, not this head
    B, S, H = hidden_states.shape
    L = classifier_w.shape[0]
    M = B * S

    Lp = _round_up(max(L, 128), 128)                 # lane-dense logits / MXU N dim
    if tile_m is None:
        tile_m = min(2048, _round_up(M, 16))
    tile_m = max(16, _round_up(tile_m, 16))          # bf16 sublane-packing friendly
    Mp = _round_up(M, tile_m)
    num_tiles = Mp // tile_m

    # Dropout(0.1) is identity at inference (predict() runs in eval mode).
    h2d = hidden_states.reshape(M, H).astype(jnp.bfloat16)
    if Mp != M:
        h2d = jnp.pad(h2d, ((0, Mp - M), (0, 0)))

    w2d = jnp.zeros((H, Lp), jnp.bfloat16).at[:, :L].set(
        classifier_w.T.astype(jnp.bfloat16))
    b2d = jnp.full((1, Lp), _NEG_INF, jnp.float32).at[0, :L].set(
        classifier_b.astype(jnp.float32))

    h_spec = pl.BlockSpec((tile_m, H), lambda i: (i, 0))
    w_spec = pl.BlockSpec((H, Lp), lambda i: (0, 0))         # VMEM-resident weight
    b_spec = pl.BlockSpec((1, Lp), lambda i: (0, 0))
    logits_spec = pl.BlockSpec((tile_m, Lp), lambda i: (i, 0))

    # VMEM budget: double-buffered h / labels / logits tiles + resident W/b.
    vmem_est = (2 * (tile_m * H * 2 + tile_m * Lp * 4 + tile_m * 4)
                + 2 * (H * Lp * 2 + Lp * 4) + 4 * 8 * Lp * 4)
    compiler_params = pltpu.CompilerParams(
        dimension_semantics=("parallel",),
        vmem_limit_bytes=int(min(64 * 2**20, max(16 * 2**20, 2 * vmem_est))),
    )

    if labels is None:
        cost = pl.CostEstimate(
            flops=2 * Mp * H * Lp,
            bytes_accessed=Mp * H * 2 + H * Lp * 2 + Lp * 4 + Mp * Lp * 4,
            transcendentals=0,
        )
        logits_pad = pl.pallas_call(
            ner_logits_kernel,
            out_shape=jax.ShapeDtypeStruct((Mp, Lp), jnp.float32),
            grid=(num_tiles,),
            in_specs=[h_spec, w_spec, b_spec],
            out_specs=logits_spec,
            compiler_params=compiler_params,
            cost_estimate=cost,
        )(h2d, w2d, b2d)
        logits = logits_pad[:M, :L].reshape(B, S, L)
        # TODO(synk): outputs.hidden_states from the HF backbone are not modeled.
        return {"logits": logits, "loss": None, "hidden_states": None}

    y1d = labels.reshape(M).astype(jnp.int32)
    if Mp != M:
        y1d = jnp.pad(y1d, (0, Mp - M), constant_values=_IGNORE_INDEX)
    y2d = y1d.reshape(Mp, 1)

    cost = pl.CostEstimate(
        flops=2 * Mp * H * Lp,
        bytes_accessed=(Mp * H * 2 + H * Lp * 2 + Lp * 4 + Mp * 4
                        + Mp * Lp * 4 + 2 * num_tiles * 8 * Lp * 4),
        transcendentals=Mp * Lp,
    )
    logits_pad, nll_parts, cnt_parts = pl.pallas_call(
        ner_loss_kernel,
        out_shape=(
            jax.ShapeDtypeStruct((Mp, Lp), jnp.float32),
            jax.ShapeDtypeStruct((8 * num_tiles, Lp), jnp.float32),
            jax.ShapeDtypeStruct((8 * num_tiles, Lp), jnp.float32),
        ),
        grid=(num_tiles,),
        in_specs=[h_spec, w_spec, b_spec,
                  pl.BlockSpec((tile_m, 1), lambda i: (i, 0))],
        out_specs=(
            logits_spec,
            pl.BlockSpec((8, Lp), lambda i: (i, 0)),
            pl.BlockSpec((8, Lp), lambda i: (i, 0)),
        ),
        compiler_params=compiler_params,
        cost_estimate=cost,
    )(h2d, w2d, b2d, y2d)

    logits = logits_pad[:M, :L].reshape(B, S, L)
    total_nll = jnp.sum(nll_parts)
    n_valid = jnp.sum(cnt_parts)
    # torch CrossEntropyLoss(reduction='mean', ignore_index=-100): sum over valid / #valid
    loss = total_nll / n_valid
    # TODO(synk): outputs.hidden_states from the HF backbone are not modeled.
    return {"logits": logits, "loss": loss, "hidden_states": None}


if __name__ == "__main__":
    # Small, deterministic shapes consistent with the module's forward.
    B, S, H = 2, 16, 32         # batch, seq, hidden_size
    NUM_LABELS = 10             # module default
    VOCAB = 64

    key = jax.random.PRNGKey(0)
    k_emb, k_ids, k_w, k_lbl = jax.random.split(key, 4)

    # ---- synthetic deterministic "backbone": embedding lookup (plain JAX glue)
    # TODO(synk): the HF AutoModel transformer encoder is not reimplemented here.
    embedding = jax.random.normal(k_emb, (VOCAB, H), dtype=jnp.float32) * 0.02
    input_ids = jax.random.randint(k_ids, (B, S), 0, VOCAB, dtype=jnp.int32)
    hidden_states = embedding[input_ids]                       # [B, S, H]

    # ---- classifier params, matching init_weights(): normal(0, 0.02), bias zero
    classifier_w = jax.random.normal(k_w, (NUM_LABELS, H), dtype=jnp.float32) * 0.02
    classifier_b = jnp.zeros((NUM_LABELS,), dtype=jnp.float32)

    labels = jax.random.randint(k_lbl, (B, S), 0, NUM_LABELS, dtype=jnp.int32)
    labels = labels.at[0, :3].set(_IGNORE_INDEX)   # exercise torch ignore_index=-100

    out = medical_ner_forward(hidden_states, classifier_w, classifier_b,
                              labels=labels, tile_m=16)        # 2 grid tiles
    jax.block_until_ready(out["logits"])
    jax.block_until_ready(out["loss"])

    out_inf = medical_ner_forward(hidden_states, classifier_w, classifier_b,
                                  labels=None, tile_m=16)      # logits-only kernel
    jax.block_until_ready(out_inf["logits"])

    # ---- plain-JAX reference (same bf16 inputs as the kernel) ----
    h_f32 = hidden_states.astype(jnp.bfloat16).astype(jnp.float32).reshape(-1, H)
    w_f32 = classifier_w.astype(jnp.bfloat16).astype(jnp.float32)
    ref_logits = jnp.dot(h_f32, w_f32.T,
                         precision=jax.lax.Precision.HIGHEST) + classifier_b
    ref_logits = ref_logits.reshape(B, S, NUM_LABELS)
    ref_logp = jax.nn.log_softmax(ref_logits, axis=-1)
    y = labels.reshape(-1)
    valid = (y != _IGNORE_INDEX)
    gathered = jnp.take_along_axis(
        ref_logp.reshape(-1, NUM_LABELS),
        jnp.where(valid, y, 0)[:, None], axis=-1)[:, 0]
    ref_loss = -jnp.sum(jnp.where(valid, gathered, 0.0)) / jnp.sum(valid)

    assert jnp.allclose(out["logits"], ref_logits, atol=1e-4), "logits mismatch"
    assert jnp.allclose(out_inf["logits"], ref_logits, atol=1e-4), "inference logits mismatch"
    assert jnp.allclose(out["loss"], ref_loss, atol=1e-4), "loss mismatch"

    print("KERNEL_OK")
</pallas_src>

<mosaic_0001>
module attributes {stable_mosaic.version = 11 : i64} {
  func.func @ner_loss_kernel(%arg0: i32, %arg1: memref<16x32xbf16, #tpu.memory_space<vmem>>, %arg2: memref<32x128xbf16, #tpu.memory_space<vmem>>, %arg3: memref<1x128xf32, #tpu.memory_space<vmem>>, %arg4: memref<16x1xi32, #tpu.memory_space<vmem>>, %arg5: memref<16x128xf32, #tpu.memory_space<vmem>>, %arg6: memref<8x128xf32, #tpu.memory_space<vmem>>, %arg7: memref<8x128xf32, #tpu.memory_space<vmem>>) attributes {dimension_semantics = [#tpu.dimension_semantics<parallel>], iteration_bounds = array<i64: 2>, scalar_prefetch = 0 : i64, scratch_operands = 0 : i64, tpu.core_type = #tpu.core_type<tc>, window_params = [{transform_indices = @transform_0, window_bounds = array<i64: 16, 32>}, {pipeline_mode = #tpu.pipeline_mode<synchronous>, transform_indices = @transform_1, window_bounds = array<i64: 32, 128>}, {pipeline_mode = #tpu.pipeline_mode<synchronous>, transform_indices = @transform_2, window_bounds = array<i64: 1, 128>}, {transform_indices = @transform_3, window_bounds = array<i64: 16, 1>}, {transform_indices = @transform_4, window_bounds = array<i64: 16, 128>}, {transform_indices = @transform_5, window_bounds = array<i64: 8, 128>}, {transform_indices = @transform_6, window_bounds = array<i64: 8, 128>}]} {
    %c0 = arith.constant 0 : index
    %c0_0 = arith.constant 0 : index
    %0 = vector.load %arg1[%c0, %c0_0] : memref<16x32xbf16, #tpu.memory_space<vmem>>, vector<16x32xbf16>
    %c0_1 = arith.constant 0 : index
    %c0_2 = arith.constant 0 : index
    %1 = vector.load %arg2[%c0_1, %c0_2] : memref<32x128xbf16, #tpu.memory_space<vmem>>, vector<32x128xbf16>
    %cst = arith.constant dense<0.000000e+00> : vector<16x128xf32>
    %2 = tpu.matmul %0, %1, %cst {dimension_numbers = #tpu.dot_dimension_numbers<[1], [0], [0], [1], [0, 0, 1, 1], [], []>} : vector<16x32xbf16>, vector<32x128xbf16>, vector<16x128xf32> -> vector<16x128xf32>
    %c0_3 = arith.constant 0 : index
    %c0_4 = arith.constant 0 : index
    %3 = vector.load %arg3[%c0_3, %c0_4] : memref<1x128xf32, #tpu.memory_space<vmem>>, vector<1x128xf32>
    %4 = vector.broadcast %3 : vector<1x128xf32> to vector<16x128xf32>
    %5 = arith.addf %2, %4 : vector<16x128xf32>
    %c0_5 = arith.constant 0 : index
    %c0_6 = arith.constant 0 : index
    %6 = vector.load %arg5[%c0_5, %c0_6] : memref<16x128xf32, #tpu.memory_space<vmem>>, vector<16x128xf32>
    tpu.vector_store %arg5[%c0_5, %c0_6], %5 {strides = array<i32>} : memref<16x128xf32, #tpu.memory_space<vmem>>, vector<16x128xf32>,
    %cst_7 = arith.constant dense<0xFF800000> : vector<16xf32>
    %7 = vector.multi_reduction <maximumf>, %5, %cst_7 [1] : vector<16x128xf32> to vector<16xf32>
    %8 = vector.shape_cast %7 : vector<16xf32> to vector<16x1xf32>
    %9 = vector.broadcast %8 : vector<16x1xf32> to vector<16x128xf32>
    %10 = arith.subf %5, %9 : vector<16x128xf32>
    %11 = math.exp %10 : vector<16x128xf32>
    %cst_8 = arith.constant dense<0.000000e+00> : vector<16xf32>
    %12 = vector.multi_reduction <add>, %11, %cst_8 [1] : vector<16x128xf32> to vector<16xf32>
    %13 = vector.shape_cast %12 : vector<16xf32> to vector<16x1xf32>
    %14 = math.log %13 : vector<16x1xf32>
    %15 = vector.broadcast %14 : vector<16x1xf32> to vector<16x128xf32>
    %16 = arith.subf %10, %15 : vector<16x128xf32>
    %17 = tpu.iota {dimensions = array<i32: 1>} : vector<16x128xi32>
    %c0_9 = arith.constant 0 : index
    %c0_10 = arith.constant 0 : index
    %18 = vector.load %arg4[%c0_9, %c0_10] : memref<16x1xi32, #tpu.memory_space<vmem>>, vector<16x1xi32>
    %19 = vector.broadcast %18 : vector<16x1xi32> to vector<16x128xi32>
    %20 = arith.cmpi eq, %17, %19 : vector<16x128xi32>
    %21 = arith.extui %20 : vector<16x128xi1> to vector<16x128xi32>
    %22 = arith.sitofp %21 : vector<16x128xi32> to vector<16x128xf32>
    %cst_11 = arith.constant 0.000000e+00 : f32
    %23 = vector.broadcast %cst_11 : f32 to vector<16x128xf32>
    %24 = arith.subf %23, %16 : vector<16x128xf32>
    %25 = arith.mulf %22, %24 : vector<16x128xf32>
    %26 = tpu.iota {dimensions = array<i32: 0>} : vector<8x128xi32>
    %c0_i32 = arith.constant 0 : i32
    %27 = vector.broadcast %c0_i32 : i32 to vector<8x128xi32>
    %28 = arith.cmpi eq, %26, %27 : vector<8x128xi32>
    %cst_12 = arith.constant dense<0.000000e+00> : vector<128xf32>
    %29 = vector.multi_reduction <add>, %25, %cst_12 [0] : vector<16x128xf32> to vector<128xf32>
    %30 = vector.shape_cast %29 : vector<128xf32> to vector<1x128xf32>
    %cst_13 = arith.constant 0.000000e+00 : f32
    %31 = vector.shape_cast %30 : vector<1x128xf32> to vector<1x128xf32>
    %32 = vector.broadcast %31 : vector<1x128xf32> to vector<8x128xf32>
    %33 = vector.broadcast %cst_13 : f32 to vector<8x128xf32>
    %34 = arith.select %28, %32, %33 : vector<8x128xi1>, vector<8x128xf32>
    %c0_14 = arith.constant 0 : index
    %c0_15 = arith.constant 0 : index
    %35 = vector.load %arg6[%c0_14, %c0_15] : memref<8x128xf32, #tpu.memory_space<vmem>>, vector<8x128xf32>
    tpu.vector_store %arg6[%c0_14, %c0_15], %34 {strides = array<i32>} : memref<8x128xf32, #tpu.memory_space<vmem>>, vector<8x128xf32>,
    %c0_i32_16 = arith.constant 0 : i32
    %36 = vector.broadcast %c0_i32_16 : i32 to vector<8x128xi32>
    %37 = arith.cmpi eq, %26, %36 : vector<8x128xi32>
    %cst_17 = arith.constant dense<0.000000e+00> : vector<128xf32>
    %38 = vector.multi_reduction <add>, %22, %cst_17 [0] : vector<16x128xf32> to vector<128xf32>
    %39 = vector.shape_cast %38 : vector<128xf32> to vector<1x128xf32>
    %cst_18 = arith.constant 0.000000e+00 : f32
    %40 = vector.shape_cast %39 : vector<1x128xf32> to vector<1x128xf32>
    %41 = vector.broadcast %40 : vector<1x128xf32> to vector<8x128xf32>
    %42 = vector.broadcast %cst_18 : f32 to vector<8x128xf32>
    %43 = arith.select %37, %41, %42 : vector<8x128xi1>, vector<8x128xf32>
    %c0_19 = arith.constant 0 : index
    %c0_20 = arith.constant 0 : index
    %44 = vector.load %arg7[%c0_19, %c0_20] : memref<8x128xf32, #tpu.memory_space<vmem>>, vector<8x128xf32>
    tpu.vector_store %arg7[%c0_19, %c0_20], %43 {strides = array<i32>} : memref<8x128xf32, #tpu.memory_space<vmem>>, vector<8x128xf32>,
    return
  }
  func.func @transform_0(%arg0: i32) -> (i32, i32) {
    %c0_i32 = arith.constant 0 : i32
    %c0_i32_0 = arith.constant 0 : i32
    return %arg0, %c0_i32 : i32, i32
  }
  func.func @transform_1(%arg0: i32) -> (i32, i32) {
    %c0_i32 = arith.constant 0 : i32
    %c0_i32_0 = arith.constant 0 : i32
    %c0_i32_1 = arith.constant 0 : i32
    return %c0_i32, %c0_i32_0 : i32, i32
  }
  func.func @transform_2(%arg0: i32) -> (i32, i32) {
    %c0_i32 = arith.constant 0 : i32
    %c0_i32_0 = arith.constant 0 : i32
    %c0_i32_1 = arith.constant 0 : i32
    return %c0_i32, %c0_i32_0 : i32, i32
  }
  func.func @transform_3(%arg0: i32) -> (i32, i32) {
    %c0_i32 = arith.constant 0 : i32
    %c0_i32_0 = arith.constant 0 : i32
    return %arg0, %c0_i32 : i32, i32
  }
  func.func @transform_4(%arg0: i32) -> (i32, i32) {
    %c0_i32 = arith.constant 0 : i32
    %c0_i32_0 = arith.constant 0 : i32
    return %arg0, %c0_i32 : i32, i32
  }
  func.func @transform_5(%arg0: i32) -> (i32, i32) {
    %c0_i32 = arith.constant 0 : i32
    %c0_i32_0 = arith.constant 0 : i32
    return %arg0, %c0_i32 : i32, i32
  }
  func.func @transform_6(%arg0: i32) -> (i32, i32) {
    %c0_i32 = arith.constant 0 : i32
    %c0_i32_0 = arith.constant 0 : i32
    return %arg0, %c0_i32 : i32, i32
  }
}

</mosaic_0001>

<bundles_post_ra>
// kernel: tpu_custom_call.1
= control target key start
LH: loop header
LB: loop body
LE: loop exit
PB: predicated region body
PF: predicated region fallthrough
CT: control target
= control target key end

     0   :  { %12 = vsyncpa [#allocation3], 0  ;;  %s1094_s0 = inlined_call_operand.vmem [shape: bf16[32,32], index: 0, kind: input, shape index: {}]   ;;  %s1095_s1 = inlined_call_operand.vmem [shape: bf16[32,128], index: 1, kind: input, shape index: {}]   ;;  %s1096_s2 = inlined_call_operand.vmem [shape: f32[1,128], index: 2, kind: input, shape index: {}]   ;;  %s1097_s3 = inlined_call_operand.vmem [shape: s32[32,1], index: 3, kind: input, shape index: {}]   ;;  %s1098_s4 = inlined_call_operand.hbm [shape: f32[32,128], index: 4, kind: output, shape index: {0}]   ;;  %s1099_s5 = inlined_call_operand.hbm [shape: f32[16,128], index: 5, kind: output, shape index: {1}]   ;;  %s1100_s6 = inlined_call_operand.hbm [shape: f32[16,128], index: 6, kind: output, shape index: {2}]  }
   0x1   :  { %14 = vsyncpa [#allocation3 + $0x1], 0 }
   0x2   :  { %15 = vsyncpa [#allocation5], 0 }
   0x3   :  { %17 = vsyncpa [#allocation5 + $0x1], 0  ;;  %s890_s21 = smov 0   ;;  %s892_s22 = smov 0  }
   0x4   :  { %s894_s23 = smov 0   ;;  %s896_s24 = smov 0  }
   0x5 LB: > { %s911_s25 = sadd.s32 4294967295, %s845_s24   ;;  %s617_s26 = sadd.s32 4294967294, %s845_s24   ;;  %s845_s24 = sphi %s896_s24, %s1106_s24   ;;  %s841_s23 = sphi %s894_s23, %s1105_s23   ;;  %s837_s22 = sphi %s892_s22, %s1104_s22   ;;  %s833_s21 = sphi %s890_s21, %s1103_s21  }
   0x6   : > { %s915_s27 = sadd.s32 1, %s845_s24   ;;  %s124_s28 = sadd.s32 1, %s841_s23 }
   0x7   : > { %s121_s29 = ssub.s32 %s845_s24, %s915_s27  ;;  %p134_p0 = scmp.ne.s32.totalorder %s841_s23, %s837_s22 }
   0x8   : > { %p122_p1 = scmp.eq.s32.totalorder %s121_s29, 0  ;;  %p135_p2 = scmp.eq.s32.totalorder %s911_s25, 1 }
   0x9   : > { %p140_p3 = scmp.ne.s32.totalorder %s837_s22, %s833_s21  ;;  %p141_p4 = scmp.eq.s32.totalorder %s617_s26, 1 }
   0xa   : > { %s928_s30 = scalar_select %p122_p1, %s841_s23, %s124_s28  }
   0xb   : > { %p930_p5 = por %p135_p2, %p134_p0  ;;  %p934_p6 = por %p141_p4, %p140_p3 }
   0xc   : > { %p620_p7 = scmp.ge.s32.totalorder %s845_s24, 1  ;;  %p235_p8 = scmp.lt.s32.totalorder %s845_s24, 3 }
   0xe   : > { %p236_p9 = pnand %p620_p7, %p235_p8 }
   0xf   : > { %v712_v0 = vld [vmem:[%s1095_s1] sm:$0xff] (!%p236_p9)   ;;  %v847_v1 = vmov (!%p236_p9), 0.0   ;;  %v713_v2 = vld [vmem:[%s1095_s1 + $0x8] sm:$0xff] (!%p236_p9)   ;;  %vm848_vm0 = vmmov (!%p236_p9), 0   ;;  %s624_s13 = sshll.u32 (!%p236_p9), %s911_s25, 1  ;;  %vm324_vm1 = vcmask (!%p236_p9), 261120  }
  0x10   : > { %239 = sbr.rel (%p236_p9) target bundleno = 614 (0x266), region = 36  ;;  %648 = vmatprep.subr.bf16.mxu0 (!%p236_p9), %v847_v1  ;;  %652 = vmatprep.mubr.msk.bf16.mxu0 (!%p236_p9), %vm848_vm0, %v847_v1  ;;  %p281_p10 = scmp.lt.s32.totalorder (!%p236_p9), %s624_s13, 3  ;;  %v628_v4 = vld [vmem:[%s1096_s2] ss:$0 sm:$0xff] (!%p236_p9)  ;;  %v849_v11 = vmov (!%p236_p9), 0  }
  0x11   : > { %649 = vmatpush3.bf16.msra.mxu0 (!%p236_p9), %v712_v0  ;;  %s954_s18 = sand.u32 (!%p236_p9), 1, %s837_s22   ;;  %711 = vset.pattern.permute.xlu1 (!%p236_p9), %v849_v11  ;;  %s850_s28 = smov (!%p236_p9), [#allocation2]  }
  0x12   : > { %650 = vmatprep.subr.bf16.mxu0 (!%p236_p9), %v847_v1  ;;  %s621_s19 = sshll.u32 (!%p236_p9), %s954_s18, 4  ;;  %710 = vset.pattern.permute.xlu0 (!%p236_p9), %v849_v11 }
  0x13   : > { %s960_s29 = scalar_lea.vmem (!%p236_p9), [#allocation2], %s621_s19  ;;  %s433_s19 = scalar_lea.sflag (!%p236_p9), [#allocation3], %s954_s18 }
  0x15   : > { %651 = vmatpush3.bf16.msra.mxu0 (!%p236_p9), %v713_v2 }
  0x17   : > { %s1108_s13 = smov (!%p281_p10, %s624_s13), 3 }
  0x18   : > { %s625_s14 = sshll.u32 %s1108_s13, 2  ;;  %s627_s9 = sshll.u32 %s1108_s13, 3 }
  0x19   : > { %s284_s17 = scalar_lea.vmem %s1094_s0, %s625_s14  ;;  %s290_s12 = scalar_lea.vmem %s1097_s3, %s627_s9 }
  0x1a   : > { %v714_v3 = vld [vmem:[%s284_s17] sm:$0xff]   ;;  %v394_v21 = vld [vmem:[%s290_s12 + $0x8] sm:$0xff]  ;;  %s456_s13 = sshll.u32 %s960_s29, 4  ;;  %s644_s14 = sshll.u32 %s911_s25, 8  ;;  %s974_s13 = int_to_ptr.vmem [resolvable:$true] %s456_s13 }
  0x1b   : > { %653 = vmatmul.mubr.msk.bf16.vlgmr.msra.gmra.mrb[0].mxu0 %vm324_vm1, %v714_v3  ;;  %v393_v12 = vld [vmem:[%s290_s12] sm:$0xff]  ;;  %s980_s17 = scalar_lea.hbm %s1098_s4, %s644_s14  ;;  %s723_s20 = scalar_lea.vmem %s974_s13, 256 }
  0x1c   : > { %p724_p11 = scmp.ne.s32.totalorder %s974_s13, %s723_s20  ;;  %s727_s9 = sshll.u32 %s850_s28, 4  ;;  %s728_s9 = int_to_ptr.vmem [resolvable:$false] %s727_s9 }
  0x1d   : > { %p730_p0 = scmp.lt.s32.totalorder %s974_s13, %s728_s9 }
  0x1e   : > { %p725_p12 = pnand %p724_p11, %p930_p5 }
  0x20   : > { %p726_p13 = pneg %p725_p12 }
  0xee   : > { %v362_v5 = vpop.f32.mrb[0].mxu0 }
  0xef   : > { %v363_v6 = vadd.f32 %v628_v4, %v362_v5  ;;  %v654_v7 = vpop.f32.mrb[1].mxu0 }
  0xf0   : > { %v365_v8 = vpop.f32.mrb[2].mxu0 }
  0xf1   : > { %369 = vst [vmem:[%s960_s29] sm:$0xff] %v363_v6  ;;  %v366_v9 = vadd.f32 %v628_v4, %v365_v8  ;;  %371 = vmax.xlane.f32.xlu0 %v363_v6  ;;  %v655_v10 = vpop.f32.mrb[3].mxu0 }
  0xf3   : > { %370 = vst [vmem:[%s960_s29 + $0x8] sm:$0xff] %v366_v9  ;;  %s729_s29 = scalar_lea.vmem %s728_s9, 512 }
  0xf4   : > { %p731_p1 = scmp.lt.s32.totalorder %s729_s29, %s723_s20 }
  0xf5   : > { %373 = vmax.xlane.f32.xlu0 %v366_v9 }
  0xf6   : > { %p732_p2 = por %p731_p1, %p730_p0 }
  0xf8   : > { %p733_p3 = pnand %p732_p2, %p726_p13 }
 0x10b   : > { %396 = vperm.xlu0 %710, %v393_v12  }
 0x17e   : > { %v372_v13 = vpop.xlane.xlu0 %371 }
 0x17f   : > { %v967_v14 = vsub.f32 %v363_v6, %v372_v13 }
 0x181   : > { %v377_v15 = vmul.f32 1.442695, %v967_v14 }
 0x182   : > { %v374_v16 = vpop.xlane.xlu0 %373 }
 0x183   : > { %v970_v17 = vsub.f32 %v366_v9, %v374_v16  ;;  %715 = vpow2.f32 %v377_v15 }
 0x185   : > { %v379_v18 = vmul.f32 1.442695, %v970_v17 }
 0x187   : > { %717 = vpow2.f32 %v379_v18 }
 0x18d   : > { %v716_v19 = vpop.eup %715 }
 0x18e   : > { %381 = vadd.xlane.f32.xlu1 %v716_v19 }
 0x191   : > { %v718_v20 = vpop.eup %717 }
 0x192   : > { %383 = vadd.xlane.f32.xlu1 %v718_v20 }
 0x1a3   : > { %399 = vperm.xlu1 %711, %v394_v21  }
 0x1a4   : > { %736 = shalt.err (!%p733_p3)
}
 0x1a5   : > { %s737_s10 = scalar_lea.hbm %s980_s17, 256  ;;  %s741_s14 = scalar_lea.hbm %s1098_s4, 512 }
 0x1a6   : > { %p738_p4 = scmp.ne.s32.totalorder %s980_s17, %s737_s10  ;;  %p742_p9 = scmp.lt.u32.totalorder %s980_s17, %s1098_s4 }
 0x1a7   : > { %p743_p10 = scmp.lt.u32.totalorder %s741_s14, %s737_s10  ;;  %p745_p12 = scmp.lt.u32.totalorder %s737_s10, %s980_s17 }
 0x1a8   : > { %p739_p7 = pnand %p738_p4, %p930_p5 }
 0x1a9   : > { %p744_p11 = por %p743_p10, %p742_p9 }
 0x1aa   : > { %p740_p8 = pneg %p739_p7 }
 0x1ab   : > { %p746_p13 = por %p745_p12, %p744_p11 }
 0x1ad   : > { %p747_p0 = pnand %p746_p13, %p740_p8 }
 0x1af   : > { %750 = shalt.err (!%p747_p0)
}
 0x1b0   : > { %s851_s20 = smov 128   ;;  %s852_s28 = smov 8   ;;  %v391_v22 = vlaneseq  ;;  %v397_v25 = vpop.permute.xlu0 %396 }
 0x1b1   : > { %656 = dma.vmem_to_hbm [thread:$0]  (%p930_p5), %s974_s13, 256, %s980_s17, %s433_s19, %s851_s20, %s851_s20, %s852_s28  }
 0x1b2   : > { %v392_v24 = vand.u32 127, %v391_v22  ;;  %v412_v41 = vshrl.u32 %v391_v22, 7  ;;  %s622_s13 = sshll.u32 %s954_s18, 3  ;;  %s437_s19 = sand.u32 1, %s911_s25  }
 0x1b3   : > { %s279_s17 = scalar_lea.vmem [#allocation6], %s622_s13  ;;  %s640_s9 = sshll.u32 %s911_s25, 7 }
 0x1b4   : > { %vm401_vm2 = vcmp.eq.s32.totalorder %v392_v24, %v397_v25  ;;  %vm413_vm4 = vcmp.eq.s32.totalorder %v412_v41, 0  ;;  %s272_s18 = scalar_lea.vmem [#allocation4], %s622_s13  ;;  %s485_s10 = sshll.u32 %s279_s17, 4  ;;  %s1027_s10 = int_to_ptr.vmem [resolvable:$true] %s485_s10 }
 0x1b5   : > { %v633_v28 = vsel %vm401_vm2, 1.0, %v847_v1  ;;  %s472_s29 = sshll.u32 %s272_s18, 4  ;;  %s1017_s14 = scalar_lea.hbm %s1099_s5, %s640_s9  ;;  %s1019_s29 = int_to_ptr.vmem [resolvable:$true] %s472_s29 }
 0x1b6   : > { %s1025_s25 = scalar_lea.hbm %s1100_s6, %s640_s9  ;;  %s1029_s20 = scalar_lea.sflag [#allocation5], %s437_s19 }
 0x1b7   : > { %s751_s28 = scalar_lea.vmem %s1019_s29, 128  ;;  %s853_s13 = smov [#allocation4]  }
 0x1b8   : > { %p752_p1 = scmp.ne.s32.totalorder %s1019_s29, %s751_s28 }
 0x1ba   : > { %p753_p2 = pnand %p752_p1, %p930_p5 }
 0x1bc   : > { %p754_p3 = pneg %p753_p2 }
 0x21b   : > { %v382_v23 = vpop.xlane.xlu1 %381 }
 0x21c   : > { %719 = vlog2.f32 %v382_v23 }
 0x21f   : > { %v384_v26 = vpop.xlane.xlu1 %383 }
 0x220   : > { %721 = vlog2.f32 %v384_v26 }
 0x223   : > { %v400_v27 = vpop.permute.xlu1 %399 }
 0x224   : > { %vm402_vm3 = vcmp.eq.s32.totalorder %v392_v24, %v400_v27 }
 0x225   : > { %v634_v29 = vsel %vm402_vm3, 1.0, %v847_v1 }
 0x226   : > { %v720_v30 = vpop.eup %719  ;;  %v423_v31 = vadd.f32 %v634_v29, %v633_v28 }
 0x227   : > { %v386_v32 = vmul.f32 0.6931472, %v720_v30 }
 0x228   : > { %v424_v33 = vrot.slane %v423_v31, 4 }
 0x229   : > { %v389_v34 = vsub.f32 %v967_v14, %v386_v32 }
 0x22a   : > { %v722_v35 = vpop.eup %721  ;;  %v425_v36 = vadd.f32 %v424_v33, %v423_v31 }
 0x22b   : > { %v388_v37 = vmul.f32 0.6931472, %v722_v35  ;;  %v407_v40 = vsub.f32 0.0, %v389_v34 }
 0x22c   : > { %v426_v38 = vrot.slane %v425_v36, 2 }
 0x22d   : > { %v390_v39 = vsub.f32 %v970_v17, %v388_v37  ;;  %v409_v46 = vmul.f32 %v633_v28, %v407_v40 }
 0x22e   : > { %v427_v42 = vadd.f32 %v426_v38, %v425_v36 }
 0x22f   : > { %v408_v43 = vsub.f32 0.0, %v390_v39 }
 0x230   : > { %v428_v44 = vrot.slane %v427_v42, 1 }
 0x231   : > { %v410_v45 = vmul.f32 %v634_v29, %v408_v43 }
 0x232   : > { %v429_v47 = vadd.f32 %v428_v44, %v427_v42 }
 0x233   : > { %v414_v48 = vadd.f32 %v410_v45, %v409_v46 }
 0x234   : > { %v430_v49 = vsel %vm413_vm4, %v429_v47, 0.0 }
 0x235   : > { %v415_v50 = vrot.slane %v414_v48, 4  ;;  %431 = vst [vmem:[%s279_s17] sm:$0xff] %v430_v49  ;;  %s755_s17 = sshll.u32 %s853_s13, 4  ;;  %s756_s17 = int_to_ptr.vmem [resolvable:$false] %s755_s17 }
 0x236   : > { %s757_s11 = scalar_lea.vmem %s756_s17, 256  ;;  %p758_p4 = scmp.lt.s32.totalorder %s1019_s29, %s756_s17 }
 0x237   : > { %v416_v51 = vadd.f32 %v415_v50, %v414_v48  ;;  %p759_p7 = scmp.lt.s32.totalorder %s757_s11, %s751_s28 }
 0x239   : > { %v417_v52 = vrot.slane %v416_v51, 2  ;;  %p760_p8 = por %p759_p7, %p758_p4 }
 0x23b   : > { %v418_v53 = vadd.f32 %v417_v52, %v416_v51  ;;  %p761_p9 = pnand %p760_p8, %p754_p3 }
 0x23d   : > { %v419_v54 = vrot.slane %v418_v53, 1 }
 0x23f   : > { %v420_v55 = vadd.f32 %v419_v54, %v418_v53 }
 0x241   : > { %v421_v56 = vsel %vm413_vm4, %v420_v55, 0.0 }
 0x242   : > { %422 = vst [vmem:[%s272_s18] sm:$0xff] %v421_v56 }
 0x243   : > { %764 = shalt.err (!%p761_p9)
}
 0x244   : > { %s765_s19 = scalar_lea.hbm %s1017_s14, 128  ;;  %s769_s12 = scalar_lea.hbm %s1099_s5, 256 }
 0x245   : > { %p766_p10 = scmp.ne.s32.totalorder %s1017_s14, %s765_s19  ;;  %p770_p13 = scmp.lt.u32.totalorder %s1017_s14, %s1099_s5 }
 0x246   : > { %p771_p0 = scmp.lt.u32.totalorder %s769_s12, %s765_s19  ;;  %p773_p2 = scmp.lt.u32.totalorder %s765_s19, %s1017_s14 }
 0x247   : > { %p767_p11 = pnand %p766_p10, %p930_p5 }
 0x248   : > { %p772_p1 = por %p771_p0, %p770_p13 }
 0x249   : > { %p768_p12 = pneg %p767_p11 }
 0x24a   : > { %p774_p3 = por %p773_p2, %p772_p1 }
 0x24c   : > { %p775_p4 = pnand %p774_p3, %p768_p12 }
 0x24e   : > { %778 = shalt.err (!%p775_p4)
}
 0x24f   : > { %657 = dma.vmem_to_hbm [thread:$0]  (%p930_p5), %s1019_s29, 128, %s1017_s14, %s1029_s20  }
 0x250   : > { %s779_s28 = scalar_lea.vmem %s1027_s10, 128  ;;  %s854_s13 = smov [#allocation6]  }
 0x251   : > { %p780_p7 = scmp.ne.s32.totalorder %s1027_s10, %s779_s28  ;;  %s783_s17 = sshll.u32 %s854_s13, 4  ;;  %s784_s17 = int_to_ptr.vmem [resolvable:$false] %s783_s17 }
 0x252   : > { %s785_s11 = scalar_lea.vmem %s784_s17, 256  ;;  %p786_p10 = scmp.lt.s32.totalorder %s1027_s10, %s784_s17 }
 0x253   : > { %p781_p8 = pnand %p780_p7, %p930_p5  ;;  %p787_p11 = scmp.lt.s32.totalorder %s785_s11, %s779_s28 }
 0x255   : > { %p782_p9 = pneg %p781_p8  ;;  %p788_p12 = por %p787_p11, %p786_p10 }
 0x257   : > { %p789_p13 = pnand %p788_p12, %p782_p9 }
 0x259   : > { %792 = shalt.err (!%p789_p13)
}
 0x25a   : > { %s793_s29 = scalar_lea.hbm %s1025_s25, 128  ;;  %s797_s9 = scalar_lea.hbm %s1100_s6, 256 }
 0x25b   : > { %p794_p0 = scmp.ne.s32.totalorder %s1025_s25, %s793_s29  ;;  %p798_p3 = scmp.lt.u32.totalorder %s1025_s25, %s1100_s6 }
 0x25c   : > { %p799_p4 = scmp.lt.u32.totalorder %s797_s9, %s793_s29  ;;  %p801_p8 = scmp.lt.u32.totalorder %s793_s29, %s1025_s25 }
 0x25d   : > { %p795_p1 = pnand %p794_p0, %p930_p5 }
 0x25e   : > { %p800_p7 = por %p799_p4, %p798_p3 }
 0x25f   : > { %p796_p2 = pneg %p795_p1 }
 0x260   : > { %p802_p9 = por %p801_p8, %p800_p7 }
 0x262   : > { %p803_p10 = pnand %p802_p9, %p796_p2 }
 0x264   : > { %806 = shalt.err (!%p803_p10)
}
 0x265   : > { %658 = dma.vmem_to_hbm [thread:$0]  (%p930_p5), %s1027_s10, 128, %s1025_s25, %s1029_s20  }
 0x266 PF: > { %p672_p11 = scmp.ge.s32.totalorder %s845_s24, 2  ;;  %s497_s15 = sand.u32 1, %s833_s21  }
 0x267   : > { %s498_s16 = scalar_lea.sflag [#allocation3], %s497_s15 }
 0x268   : > { %p663_p12 = pnand %p672_p11, %p934_p6 }
 0x26a   : > { %824 = dma.done.wait (!%p663_p12), %s498_s16, 256  }
 0x26b   : > { %826 = vsyncadd (!%p663_p12), %s498_s16, 4294967040  ;;  %s506_s28 = sand.u32 1, %s617_s26  }
 0x26c   : > { %s507_s13 = scalar_lea.sflag [#allocation5], %s506_s28 }
 0x26d   : > { %828 = dma.done.wait (!%p663_p12), %s507_s13, 256  }
 0x26e   : > { %830 = vsyncadd (!%p663_p12), %s507_s13, 4294967040  ;;  %p20_p5 = scmp.ge.s32.totalorder %s915_s27, 4   ;;  %s1103_s21 = smov %s837_s22 }
 0x26f   : > { %s1104_s22 = smov %s841_s23  ;;  %s1105_s23 = smov %s928_s30 }
 0x270   : > { %s1106_s24 = smov %s915_s27  ;;  %22 = sbr.rel (!%p20_p5) target bundleno = 5 (0x5), region = 106 }
 0x277   :  { %521 = vsyncpa [#allocation3], 1 }
 0x278   :  { %523 = vsyncpa [#allocation3 + $0x1], 1 }
 0x279   :  { %524 = vsyncpa [#allocation5], 1 }
 0x27a   :  { %526 = vsyncpa [#allocation5 + $0x1], 1 }

</bundles_post_ra>
